<compile_context>
chip_gen: v7x
topology: tpu7x:2x2x1
jax: 0.10.0
libtpu: 0.0.40
codegen_flags: <defaults>
</compile_context>

<pallas_src>
from functools import partial

import jax
import jax.numpy as jnp
from jax.experimental import pallas as pl
from jax.experimental.pallas import tpu as pltpu


def _attention_kernel(x_ref, wqkv_ref, wproj_ref, b_ref, o_ref, *, num_heads):
    N, C = x_ref.shape[1], x_ref.shape[2]
    H = num_heads
    D = C // H

    x = x_ref[0]                                     # (N, C), native dtype
    wqkv = wqkv_ref[...]                             # (C, 3C), q-scale pre-folded
    wproj = wproj_ref[...]                           # (C, C)
    bias = b_ref[...].astype(jnp.float32)            # (1, C)

    # (1) Fused lane-dense QKV projection: one MXU matmul, output width 3C.
    #     f32 accumulation, result cast back to the input dtype so downstream
    #     matmuls take the fast MXU path (bf16 on v6e/v7x when x is bf16).
    qkv = jnp.dot(x, wqkv, preferred_element_type=jnp.float32).astype(x.dtype)

    # (2) Repackage per-head (H, N, D) slabs.  Pure relayout: static lane
    #     slices + stack along a new leading axis (no compute at width D).
    def heads(t):
        return jnp.stack([t[:, h * D:(h + 1) * D] for h in range(H)], axis=0)

    q = heads(qkv[:, 0 * C:1 * C])
    k = heads(qkv[:, 1 * C:2 * C])
    v = heads(qkv[:, 2 * C:3 * C])

    # (3) Head-batched scores; contract q and k over d (no explicit k.T).
    #     Scale was folded into the Q projection weights offline.
    s = jnp.einsum('hnd,hmd->hnm', q, k, preferred_element_type=jnp.float32)

    # (4) Numerically stable softmax, all element-wise math in f32.
    #     Normalization deferred to the (H,N,D) output; exact divide.
    m = jnp.max(s, axis=-1, keepdims=True)           # (H, N, 1)
    p = jnp.exp(s - m)                                # (H, N, N) unnormalized
    l = jnp.sum(p, axis=-1, keepdims=True)            # (H, N, 1)

    o = jnp.einsum('hnm,hmd->hnd', p.astype(v.dtype), v,
                   preferred_element_type=jnp.float32)   # (H, N, D) f32
    o = o / l                                             # deferred normalization

    # (5) Merge heads back to a lane-dense (N, C) slab (== the reference
    #     transpose+reshape concat order) and run the output projection as a
    #     single (N,C)x(C,C) MXU matmul.
    o = jnp.concatenate([o[h] for h in range(H)], axis=-1).astype(x.dtype)
    y = jnp.dot(o, wproj, preferred_element_type=jnp.float32) + bias

    o_ref[0] = y.astype(o_ref.dtype)


def attention_pallas(x, w_qkv, w_proj, b_proj, *, num_heads):
    """x: (B, N, C); w_qkv: (C, 3C); w_proj: (C, C); b_proj: (1, C).

    Linear weights are stored transposed vs. torch.nn.Linear, i.e. (in, out),
    so y = x @ W (+ b).  attn_drop / proj_drop are 0.0 -> identity."""
    B, N, C = x.shape
    H = num_heads
    D = C // H
    scale = D ** (-0.5)

    # Fold the softmax scale into the Q columns of the fused qkv weight.
    # Done in f32 (before any downcast) so the folding is exact.
    w_qkv_s = jnp.concatenate(
        [w_qkv[:, :C].astype(jnp.float32) * scale,
         w_qkv[:, C:].astype(jnp.float32)], axis=1).astype(w_qkv.dtype)

    # Advisory cost estimate for the XLA scheduler around the custom call.
    flops = (2 * B * N * C * 3 * C          # fused qkv projection
             + 4 * B * H * N * N * D        # scores + attn@v
             + 2 * B * N * C * C)           # output projection
    bytes_accessed = (x.size * x.dtype.itemsize * 2   # x in + y out
                      + w_qkv_s.size * w_qkv_s.dtype.itemsize
                      + w_proj.size * w_proj.dtype.itemsize
                      + b_proj.size * b_proj.dtype.itemsize)
    cost = pl.CostEstimate(flops=flops,
                           transcendentals=B * H * N * N,
                           bytes_accessed=bytes_accessed)

    kernel = partial(_attention_kernel, num_heads=H)

    # TODO(synk): for production ViT sizes (N~1k, C=768) replace the per-B grid
    # with a (B, H, q-tile) flash-style grid streaming K/V in BlockSpec tiles.
    return pl.pallas_call(
        kernel,
        out_shape=jax.ShapeDtypeStruct((B, N, C), x.dtype),
        grid=(B,),
        in_specs=[
            pl.BlockSpec((1, N, C), lambda b: (b, 0, 0)),      # x       (per-batch tile)
            pl.BlockSpec((C, 3 * C), lambda b: (0, 0)),        # Wqkv    (resident)
            pl.BlockSpec((C, C), lambda b: (0, 0)),            # Wproj   (resident)
            pl.BlockSpec((1, C), lambda b: (0, 0)),            # bproj   (resident)
        ],
        out_specs=pl.BlockSpec((1, N, C), lambda b: (b, 0, 0)),
        compiler_params=pltpu.CompilerParams(
            dimension_semantics=("parallel",)),
        cost_estimate=cost,
    )(x, w_qkv_s, w_proj, b_proj)


def attention_ref(x, w_qkv, w_proj, b_proj, *, num_heads):
    """Pure-JAX reference matching the PyTorch forward."""
    B, N, C = x.shape
    D = C // num_heads
    scale = D ** (-0.5)
    qkv = jnp.einsum('bnc,cf->bnf', x, w_qkv)                      # (B, N, 3C)
    qkv = qkv.reshape(B, N, 3, num_heads, D).transpose(2, 0, 3, 1, 4)
    q, k, v = qkv[0], qkv[1], qkv[2]                               # (B, H, N, D)
    attn = jnp.einsum('bhnd,bhmd->bhnm', q, k) * scale
    attn = jax.nn.softmax(attn, axis=-1)
    out = jnp.einsum('bhnm,bhmd->bhnd', attn, v)                   # (B, H, N, D)
    out = out.transpose(0, 2, 1, 3).reshape(B, N, C)
    return jnp.einsum('bnc,cd->bnd', out, w_proj) + b_proj[0]


if __name__ == "__main__":
    # Small shapes consistent with the module: dim=C=32, num_heads=4 -> head_dim=8.
    B, N, C = 2, 16, 32
    num_heads = 4

    key = jax.random.PRNGKey(0)
    kx, kqkv, kproj, kb = jax.random.split(key, 4)

    x = jax.random.normal(kx, (B, N, C), dtype=jnp.float32)
    # Deterministic parameter init (synthetic, not a checkpoint).
    w_qkv = jax.random.normal(kqkv, (C, 3 * C), dtype=jnp.float32) * 0.05
    w_proj = jax.random.normal(kproj, (C, C), dtype=jnp.float32) * 0.05
    b_proj = jax.random.normal(kb, (1, C), dtype=jnp.float32) * 0.05

    y = attention_pallas(x, w_qkv, w_proj, b_proj, num_heads=num_heads)
    y = jax.block_until_ready(y)

    y_ref = attention_ref(x, w_qkv, w_proj, b_proj, num_heads=num_heads)
    assert y.shape == (B, N, C)
    # Exact softmax divide + f32 accumulation everywhere -> tight tolerance.
    assert jnp.allclose(y, y_ref, atol=1e-4, rtol=1e-4), "mismatch vs reference"

    print("KERNEL_OK")
</pallas_src>

<mosaic_0001>
module attributes {stable_mosaic.version = 11 : i64} {
  func.func @_attention_kernel(%arg0: i32, %arg1: memref<1x16x32xf32, #tpu.memory_space<vmem>>, %arg2: memref<32x96xf32, #tpu.memory_space<vmem>>, %arg3: memref<32x32xf32, #tpu.memory_space<vmem>>, %arg4: memref<1x32xf32, #tpu.memory_space<vmem>>, %arg5: memref<1x16x32xf32, #tpu.memory_space<vmem>>) attributes {dimension_semantics = [#tpu.dimension_semantics<parallel>], iteration_bounds = array<i64: 2>, scalar_prefetch = 0 : i64, scratch_operands = 0 : i64, tpu.core_type = #tpu.core_type<tc>, window_params = [{transform_indices = @transform_0, window_bounds = array<i64: 1, 16, 32>}, {pipeline_mode = #tpu.pipeline_mode<synchronous>, transform_indices = @transform_1, window_bounds = array<i64: 32, 96>}, {pipeline_mode = #tpu.pipeline_mode<synchronous>, transform_indices = @transform_2, window_bounds = array<i64: 32, 32>}, {pipeline_mode = #tpu.pipeline_mode<synchronous>, transform_indices = @transform_3, window_bounds = array<i64: 1, 32>}, {transform_indices = @transform_4, window_bounds = array<i64: 1, 16, 32>}]} {
    %c0 = arith.constant 0 : index
    %c0_0 = arith.constant 0 : index
    %c0_1 = arith.constant 0 : index
    %0 = vector.load %arg1[%c0, %c0_0, %c0_1] : memref<1x16x32xf32, #tpu.memory_space<vmem>>, vector<1x16x32xf32>
    %1 = vector.shape_cast %0 : vector<1x16x32xf32> to vector<16x32xf32>
    %c0_2 = arith.constant 0 : index
    %c0_3 = arith.constant 0 : index
    %2 = vector.load %arg2[%c0_2, %c0_3] : memref<32x96xf32, #tpu.memory_space<vmem>>, vector<32x96xf32>
    %c0_4 = arith.constant 0 : index
    %c0_5 = arith.constant 0 : index
    %3 = vector.load %arg3[%c0_4, %c0_5] : memref<32x32xf32, #tpu.memory_space<vmem>>, vector<32x32xf32>
    %c0_6 = arith.constant 0 : index
    %c0_7 = arith.constant 0 : index
    %4 = vector.load %arg4[%c0_6, %c0_7] : memref<1x32xf32, #tpu.memory_space<vmem>>, vector<1x32xf32>
    %cst = arith.constant dense<0.000000e+00> : vector<16x96xf32>
    %5 = tpu.matmul %1, %2, %cst {dimension_numbers = #tpu.dot_dimension_numbers<[1], [0], [0], [1], [0, 0, 1, 1], [], []>} : vector<16x32xf32>, vector<32x96xf32>, vector<16x96xf32> -> vector<16x96xf32>
    %6 = vector.extract_strided_slice %5 {offsets = [0, 0], sizes = [16, 32], strides = [1, 1]} : vector<16x96xf32> to vector<16x32xf32>
    %7 = vector.extract_strided_slice %6 {offsets = [0, 0], sizes = [16, 8], strides = [1, 1]} : vector<16x32xf32> to vector<16x8xf32>
    %8 = vector.extract_strided_slice %6 {offsets = [0, 8], sizes = [16, 8], strides = [1, 1]} : vector<16x32xf32> to vector<16x8xf32>
    %9 = vector.extract_strided_slice %6 {offsets = [0, 16], sizes = [16, 8], strides = [1, 1]} : vector<16x32xf32> to vector<16x8xf32>
    %10 = vector.extract_strided_slice %6 {offsets = [0, 24], sizes = [16, 8], strides = [1, 1]} : vector<16x32xf32> to vector<16x8xf32>
    %11 = vector.shape_cast %7 : vector<16x8xf32> to vector<1x16x8xf32>
    %12 = vector.shape_cast %8 : vector<16x8xf32> to vector<1x16x8xf32>
    %13 = vector.shape_cast %9 : vector<16x8xf32> to vector<1x16x8xf32>
    %14 = vector.shape_cast %10 : vector<16x8xf32> to vector<1x16x8xf32>
    %15 = tpu.concatenate %11, %12, %13, %14 in 0 : vector<1x16x8xf32>, vector<1x16x8xf32>, vector<1x16x8xf32>, vector<1x16x8xf32> -> vector<4x16x8xf32>
    %16 = vector.extract_strided_slice %5 {offsets = [0, 32], sizes = [16, 32], strides = [1, 1]} : vector<16x96xf32> to vector<16x32xf32>
    %17 = vector.extract_strided_slice %16 {offsets = [0, 0], sizes = [16, 8], strides = [1, 1]} : vector<16x32xf32> to vector<16x8xf32>
    %18 = vector.extract_strided_slice %16 {offsets = [0, 8], sizes = [16, 8], strides = [1, 1]} : vector<16x32xf32> to vector<16x8xf32>
    %19 = vector.extract_strided_slice %16 {offsets = [0, 16], sizes = [16, 8], strides = [1, 1]} : vector<16x32xf32> to vector<16x8xf32>
    %20 = vector.extract_strided_slice %16 {offsets = [0, 24], sizes = [16, 8], strides = [1, 1]} : vector<16x32xf32> to vector<16x8xf32>
    %21 = vector.shape_cast %17 : vector<16x8xf32> to vector<1x16x8xf32>
    %22 = vector.shape_cast %18 : vector<16x8xf32> to vector<1x16x8xf32>
    %23 = vector.shape_cast %19 : vector<16x8xf32> to vector<1x16x8xf32>
    %24 = vector.shape_cast %20 : vector<16x8xf32> to vector<1x16x8xf32>
    %25 = tpu.concatenate %21, %22, %23, %24 in 0 : vector<1x16x8xf32>, vector<1x16x8xf32>, vector<1x16x8xf32>, vector<1x16x8xf32> -> vector<4x16x8xf32>
    %26 = vector.extract_strided_slice %5 {offsets = [0, 64], sizes = [16, 32], strides = [1, 1]} : vector<16x96xf32> to vector<16x32xf32>
    %27 = vector.extract_strided_slice %26 {offsets = [0, 0], sizes = [16, 8], strides = [1, 1]} : vector<16x32xf32> to vector<16x8xf32>
    %28 = vector.extract_strided_slice %26 {offsets = [0, 8], sizes = [16, 8], strides = [1, 1]} : vector<16x32xf32> to vector<16x8xf32>
    %29 = vector.extract_strided_slice %26 {offsets = [0, 16], sizes = [16, 8], strides = [1, 1]} : vector<16x32xf32> to vector<16x8xf32>
    %30 = vector.extract_strided_slice %26 {offsets = [0, 24], sizes = [16, 8], strides = [1, 1]} : vector<16x32xf32> to vector<16x8xf32>
    %31 = vector.shape_cast %27 : vector<16x8xf32> to vector<1x16x8xf32>
    %32 = vector.shape_cast %28 : vector<16x8xf32> to vector<1x16x8xf32>
    %33 = vector.shape_cast %29 : vector<16x8xf32> to vector<1x16x8xf32>
    %34 = vector.shape_cast %30 : vector<16x8xf32> to vector<1x16x8xf32>
    %35 = tpu.concatenate %31, %32, %33, %34 in 0 : vector<1x16x8xf32>, vector<1x16x8xf32>, vector<1x16x8xf32>, vector<1x16x8xf32> -> vector<4x16x8xf32>
    "tpu.trace_start"() <{level = 10 : i32, message = "hnd,hmd->hnm"}> : () -> ()
    %cst_8 = arith.constant dense<0.000000e+00> : vector<4x16x16xf32>
    %36 = tpu.matmul %15, %25, %cst_8 {dimension_numbers = #tpu.dot_dimension_numbers<[2], [2], [1], [1], [0, 0, 0, 1, 1, 1], [0], [0]>} : vector<4x16x8xf32>, vector<4x16x8xf32>, vector<4x16x16xf32> -> vector<4x16x16xf32>
    "tpu.trace_stop"() : () -> ()
    %cst_9 = arith.constant dense<0xFF800000> : vector<4x16xf32>
    %37 = vector.multi_reduction <maximumf>, %36, %cst_9 [2] : vector<4x16x16xf32> to vector<4x16xf32>
    %38 = vector.shape_cast %37 : vector<4x16xf32> to vector<4x16x1xf32>
    %39 = vector.broadcast %38 : vector<4x16x1xf32> to vector<4x16x16xf32>
    %40 = arith.subf %36, %39 : vector<4x16x16xf32>
    %41 = math.exp %40 : vector<4x16x16xf32>
    %cst_10 = arith.constant dense<0.000000e+00> : vector<4x16xf32>
    %42 = vector.multi_reduction <add>, %41, %cst_10 [2] : vector<4x16x16xf32> to vector<4x16xf32>
    %43 = vector.shape_cast %42 : vector<4x16xf32> to vector<4x16x1xf32>
    "tpu.trace_start"() <{level = 10 : i32, message = "hnm,hmd->hnd"}> : () -> ()
    %cst_11 = arith.constant dense<0.000000e+00> : vector<4x16x8xf32>
    %44 = tpu.matmul %41, %35, %cst_11 {dimension_numbers = #tpu.dot_dimension_numbers<[2], [1], [1], [2], [0, 0, 0, 1, 1, 2], [0], [0]>} : vector<4x16x16xf32>, vector<4x16x8xf32>, vector<4x16x8xf32> -> vector<4x16x8xf32>
    "tpu.trace_stop"() : () -> ()
    %45 = vector.broadcast %43 : vector<4x16x1xf32> to vector<4x16x8xf32>
    %46 = arith.divf %44, %45 : vector<4x16x8xf32>
    %47 = vector.extract_strided_slice %46 {offsets = [0, 0, 0], sizes = [1, 16, 8], strides = [1, 1, 1]} : vector<4x16x8xf32> to vector<1x16x8xf32>
    %48 = vector.shape_cast %47 : vector<1x16x8xf32> to vector<16x8xf32>
    %49 = vector.extract_strided_slice %46 {offsets = [1, 0, 0], sizes = [1, 16, 8], strides = [1, 1, 1]} : vector<4x16x8xf32> to vector<1x16x8xf32>
    %50 = vector.shape_cast %49 : vector<1x16x8xf32> to vector<16x8xf32>
    %51 = vector.extract_strided_slice %46 {offsets = [2, 0, 0], sizes = [1, 16, 8], strides = [1, 1, 1]} : vector<4x16x8xf32> to vector<1x16x8xf32>
    %52 = vector.shape_cast %51 : vector<1x16x8xf32> to vector<16x8xf32>
    %53 = vector.extract_strided_slice %46 {offsets = [3, 0, 0], sizes = [1, 16, 8], strides = [1, 1, 1]} : vector<4x16x8xf32> to vector<1x16x8xf32>
    %54 = vector.shape_cast %53 : vector<1x16x8xf32> to vector<16x8xf32>
    %55 = tpu.concatenate %48, %50, %52, %54 in 1 : vector<16x8xf32>, vector<16x8xf32>, vector<16x8xf32>, vector<16x8xf32> -> vector<16x32xf32>
    %cst_12 = arith.constant dense<0.000000e+00> : vector<16x32xf32>
    %56 = tpu.matmul %55, %3, %cst_12 {dimension_numbers = #tpu.dot_dimension_numbers<[1], [0], [0], [1], [0, 0, 1, 1], [], []>} : vector<16x32xf32>, vector<32x32xf32>, vector<16x32xf32> -> vector<16x32xf32>
    %57 = vector.broadcast %4 : vector<1x32xf32> to vector<16x32xf32>
    %58 = arith.addf %56, %57 : vector<16x32xf32>
    %c0_13 = arith.constant 0 : index
    %c0_14 = arith.constant 0 : index
    %c0_15 = arith.constant 0 : index
    %59 = vector.load %arg5[%c0_13, %c0_14, %c0_15] : memref<1x16x32xf32, #tpu.memory_space<vmem>>, vector<1x16x32xf32>
    %60 = vector.shape_cast %59 : vector<1x16x32xf32> to vector<16x32xf32>
    %61 = vector.shape_cast %58 : vector<16x32xf32> to vector<1x16x32xf32>
    tpu.vector_store %arg5[%c0_13, %c0_14, %c0_15], %61 {strides = array<i32>} : memref<1x16x32xf32, #tpu.memory_space<vmem>>, vector<1x16x32xf32>,
    return
  }
  func.func @transform_0(%arg0: i32) -> (i32, i32, i32) {
    %c0_i32 = arith.constant 0 : i32
    %c0_i32_0 = arith.constant 0 : i32
    %c0_i32_1 = arith.constant 0 : i32
    return %arg0, %c0_i32, %c0_i32_0 : i32, i32, i32
  }
  func.func @transform_1(%arg0: i32) -> (i32, i32) {
    %c0_i32 = arith.constant 0 : i32
    %c0_i32_0 = arith.constant 0 : i32
    %c0_i32_1 = arith.constant 0 : i32
    return %c0_i32, %c0_i32_0 : i32, i32
  }
  func.func @transform_2(%arg0: i32) -> (i32, i32) {
    %c0_i32 = arith.constant 0 : i32
    %c0_i32_0 = arith.constant 0 : i32
    %c0_i32_1 = arith.constant 0 : i32
    return %c0_i32, %c0_i32_0 : i32, i32
  }
  func.func @transform_3(%arg0: i32) -> (i32, i32) {
    %c0_i32 = arith.constant 0 : i32
    %c0_i32_0 = arith.constant 0 : i32
    %c0_i32_1 = arith.constant 0 : i32
    return %c0_i32, %c0_i32_0 : i32, i32
  }
  func.func @transform_4(%arg0: i32) -> (i32, i32, i32) {
    %c0_i32 = arith.constant 0 : i32
    %c0_i32_0 = arith.constant 0 : i32
    %c0_i32_1 = arith.constant 0 : i32
    return %arg0, %c0_i32, %c0_i32_0 : i32, i32, i32
  }
}

</mosaic_0001>

<bundles_post_ra>
// kernel: tpu_custom_call.1
= control target key start
LH: loop header
LB: loop body
LE: loop exit
PB: predicated region body
PF: predicated region fallthrough
CT: control target
= control target key end

     0   :  { %9 = vsyncpa [#allocation3], 0  ;;  %s2280_s0 = inlined_call_operand.hbm [shape: f32[2,16,32], index: 0, kind: input, shape index: {}]   ;;  %s2281_s1 = inlined_call_operand.hbm [shape: f32[32,96], index: 1, kind: input, shape index: {}]   ;;  %s2282_s2 = inlined_call_operand.hbm [shape: f32[32,32], index: 2, kind: input, shape index: {}]   ;;  %s2283_s3 = inlined_call_operand.vmem [shape: f32[1,32], index: 3, kind: input, shape index: {}]   ;;  %s2284_s4 = inlined_call_operand.hbm [shape: f32[2,16,32], index: 4, kind: output, shape index: {}]  }
   0x1   :  { %11 = vsyncpa [#allocation3 + $0x1], 0 }
   0x2   :  { %12 = vsyncpa [#allocation6], 0 }
   0x3   :  { %13 = vsyncpa [#allocation4], 0 }
   0x4   :  { %15 = vsyncpa [#allocation4 + $0x1], 0  ;;  %s1939_s15 = smov 0   ;;  %s1941_s16 = smov 0  }
   0x5   :  { %s1943_s17 = smov 0   ;;  %s1945_s18 = smov 0  }
   0x6 LB: > { %s1960_s19 = sadd.s32 4294967295, %s1897_s18   ;;  %s1364_s20 = sadd.s32 4294967294, %s1897_s18   ;;  %s1897_s18 = sphi %s1945_s18, %s2306_s18   ;;  %s1893_s17 = sphi %s1943_s17, %s2305_s17   ;;  %s1889_s16 = sphi %s1941_s16, %s2304_s16   ;;  %s1885_s15 = sphi %s1939_s15, %s2303_s15  }
   0x7   : > { %p41_p0 = scmp.ne.s32.totalorder %s1889_s16, %s1885_s15  ;;  %p2285_p1 = scmp.eq.s32.totalorder %s1960_s19, 0 }
   0x8   : > { %p134_p3 = scmp.eq.s32.totalorder %s1364_s20, 1  ;;  %p1365_p5 = scmp.ge.s32.totalorder %s1897_s18, 1 }
   0x9   : > { %p1969_p4 = por %p2285_p1, %p41_p0  ;;  %p141_p7 = scmp.lt.s32.totalorder %s1897_s18, 3 }
   0xa   : > { %p1974_p6 = por %p134_p3, %p41_p0  ;;  %s1899_s24 = smov [#allocation5]  }
   0xb   : > { %s2288_s21 = scalar_select %p1969_p4, 1, 0 }
   0xc   : > { %s2289_s22 = scalar_select %p1974_p6, 1, 0 }
   0xd   : > { %p1979_p8 = pnand %p1365_p5, %p141_p7  ;;  %s153_s25 = sshll.u32 %s1899_s24, 4  ;;  %s1983_s25 = int_to_ptr.vmem [resolvable:$true] %s153_s25 }
   0xe   : > { %s1900_s27 = smov [#allocation7]   ;;  %s1741_s5 = scalar_lea.hbm %s2281_s1, 512 }
   0xf   : > { %p1603_p9 = pneg %p1979_p8  ;;  %s166_s28 = sshll.u32 %s1900_s27, 4  ;;  %s1994_s28 = int_to_ptr.vmem [resolvable:$true] %s166_s28 }
  0x10   : > { %p1742_p12 = scmp.ne.s32.totalorder %s2281_s1, %s1741_s5  ;;  %p1748_p5 = scmp.lt.u32.totalorder %s1741_s5, %s2281_s1 }
  0x11   : > { %p1990_p11 = pnand %p1603_p9, %p2285_p1 }
  0x13   : > { %p1743_p13 = pneg %p1990_p11 }
  0x15   : > { %p1744_p0 = pnand %p1743_p13, %p1742_p12 }
  0x17   : > { %p1745_p3 = pneg %p1744_p0 }
  0x19   : > { %p1750_p7 = pnand %p1748_p5, %p1745_p3 }
  0x1b   : > { %1753 = shalt.err (!%p1750_p7)
}
  0x1c   : > { %s1754_s10 = scalar_lea.vmem %s1983_s25, 512  ;;  %p1762_p2 = scmp.lt.s32.totalorder %s1983_s25, %s1983_s25 }
  0x1d   : > { %p1755_p9 = scmp.ne.s32.totalorder %s1983_s25, %s1754_s10  ;;  %p1763_p12 = scmp.lt.s32.totalorder %s1754_s10, %s1754_s10 }
  0x1f   : > { %p1757_p10 = pnand %p1755_p9, %p1743_p13  ;;  %p1764_p0 = por %p1763_p12, %p1762_p2 }
  0x21   : > { %p1758_p1 = pneg %p1757_p10 }
  0x23   : > { %p1765_p6 = pnand %p1764_p0, %p1758_p1 }
  0x25   : > { %1768 = shalt.err (!%p1765_p6)
}
  0x26   : > { %s1901_s11 = smov 128   ;;  %s1902_s12 = smov 8  }
  0x27   : > { %1606 = dma.hbm_to_vmem [thread:$0]  (!%p1990_p11), %s2281_s1, 512, %s1983_s25, [#allocation6], %s1901_s11, %s1901_s11, %s1902_s12  }
  0x28   : > { %s1769_s27 = scalar_lea.hbm %s2282_s2, 512 }
  0x29   : > { %p1770_p1 = scmp.ne.s32.totalorder %s2282_s2, %s1769_s27  ;;  %p1776_p10 = scmp.lt.u32.totalorder %s1769_s27, %s2282_s2 }
  0x2b   : > { %p1772_p2 = pnand %p1770_p1, %p1743_p13 }
  0x2d   : > { %p1773_p6 = pneg %p1772_p2 }
  0x2f   : > { %p1778_p3 = pnand %p1776_p10, %p1773_p6 }
  0x31   : > { %1781 = shalt.err (!%p1778_p3)
}
  0x32   : > { %s1782_s25 = scalar_lea.vmem %s1994_s28, 512  ;;  %p1790_p12 = scmp.lt.s32.totalorder %s1994_s28, %s1994_s28 }
  0x33   : > { %p1783_p5 = scmp.ne.s32.totalorder %s1994_s28, %s1782_s25  ;;  %p1791_p0 = scmp.lt.s32.totalorder %s1782_s25, %s1782_s25 }
  0x35   : > { %p1785_p7 = pnand %p1783_p5, %p1743_p13  ;;  %p1792_p1 = por %p1791_p0, %p1790_p12 }
  0x37   : > { %p1786_p9 = pneg %p1785_p7 }
  0x39   : > { %p1793_p2 = pnand %p1792_p1, %p1786_p9 }
  0x3b   : > { %1796 = shalt.err (!%p1793_p2)
}
  0x3c   : > { %1609 = dma.hbm_to_vmem [thread:$0]  (!%p1990_p11), %s2282_s2, 512, %s1994_s28, [#allocation6], %s1901_s11, %s1901_s11, %s1902_s12  }
  0x3d   : > { %s2055_s26 = sadd.s32 1, %s1897_s18   ;;  %s28_s9 = sadd.s32 1, %s1893_s17 }
  0x3e   : > { %s25_s10 = ssub.s32 %s1897_s18, %s2055_s26  ;;  %p35_p13 = scmp.ne.s32.totalorder %s1893_s17, %s1889_s16 }
  0x3f   : > { %p26_p6 = scmp.eq.s32.totalorder %s25_s10, 0  ;;  %p36_p10 = scmp.eq.s32.totalorder %s1897_s18, 0 }
  0x40   : > { %p2292_p3 = scmp.eq.s32.totalorder %s1960_s19, 1  ;;  %p1620_p7 = scmp.lt.s32.totalorder %s1897_s18, 2 }
  0x41   : > { %s2071_s14 = scalar_select %p26_p6, %s1893_s17, %s28_s9  }
  0x42   : > { %p2065_p5 = por %p2292_p3, %p35_p13  ;;  %p37_p9 = por %p36_p10, %p35_p13 }
  0x43   : > { %s183_s20 = sand.u32 1, %s1893_s17   ;;  %s1411_s28 = sshll.u32 %s1897_s18, 8 }
  0x44   : > { %s2293_s13 = scalar_select %p2065_p5, 1, 0 }
  0x45   : > { %s1369_s24 = sshll.u32 %s183_s20, 4  ;;  %s2078_s30 = scalar_lea.hbm %s2280_s0, %s1411_s28 }
  0x46   : > { %s187_s5 = scalar_lea.vmem [#allocation2], %s1369_s24  ;;  %p2082_p11 = pnand %p1620_p7, %p37_p9 }
  0x47   : > { %s194_s6 = sshll.u32 %s187_s5, 4  ;;  %s2086_s7 = scalar_lea.sflag [#allocation3], %s183_s20  ;;  %s2080_s6 = int_to_ptr.vmem [resolvable:$true] %s194_s6 }
  0x48   : > { %s1797_s8 = scalar_lea.hbm %s2078_s30, 256  ;;  %p1799_p0 = pneg %p2082_p11 }
  0x49   : > { %p1798_p12 = scmp.ne.s32.totalorder %s2078_s30, %s1797_s8  ;;  %s1802_s24 = scalar_lea.hbm %s2280_s0, 512 }
  0x4a   : > { %p1803_p13 = scmp.lt.u32.totalorder %s2078_s30, %s2280_s0  ;;  %p1804_p6 = scmp.lt.u32.totalorder %s1802_s24, %s1797_s8 }
  0x4b   : > { %p1800_p1 = pnand %p1799_p0, %p1798_p12  ;;  %p1806_p3 = scmp.lt.u32.totalorder %s1797_s8, %s2078_s30 }
  0x4c   : > { %p1805_p10 = por %p1804_p6, %p1803_p13 }
  0x4d   : > { %p1801_p2 = pneg %p1800_p1 }
  0x4e   : > { %p1807_p7 = por %p1806_p3, %p1805_p10 }
  0x50   : > { %p1808_p9 = pnand %p1807_p7, %p1801_p2 }
  0x52   : > { %1811 = shalt.err (!%p1808_p9)
}
  0x53   : > { %s1812_s20 = scalar_lea.vmem %s2080_s6, 256  ;;  %s1903_s29 = smov [#allocation2]  }
  0x54   : > { %p1813_p12 = scmp.ne.s32.totalorder %s2080_s6, %s1812_s20  ;;  %s1817_s5 = sshll.u32 %s1903_s29, 4  ;;  %s1818_s5 = int_to_ptr.vmem [resolvable:$false] %s1817_s5 }
  0x55   : > { %s1819_s9 = scalar_lea.vmem %s1818_s5, 512  ;;  %p1820_p4 = scmp.lt.s32.totalorder %s2080_s6, %s1818_s5 }
  0x56   : > { %p1815_p1 = pnand %p1813_p12, %p1799_p0  ;;  %p1821_p13 = scmp.lt.s32.totalorder %s1819_s9, %s1812_s20 }
  0x58   : > { %p1816_p5 = pneg %p1815_p1  ;;  %p1822_p6 = por %p1821_p13, %p1820_p4 }
  0x5a   : > { %p1823_p10 = pnand %p1822_p6, %p1816_p5 }
  0x5c   : > { %1826 = shalt.err (!%p1823_p10)
}
  0x5d   : > { %1613 = dma.hbm_to_vmem [thread:$0]  (!%p2082_p11), %s2078_s30, 256, %s2080_s6, %s2086_s7, %s1901_s11, %s1901_s11, %s1902_s12  }
  0x5e   : > { %206 = sbr.rel (%p1979_p8) target bundleno = 1563 (0x61b), region = 36  ;;  %s2120_s8 = sand.u32 (!%p1979_p8), 1, %s1889_s16  }
  0x5f   : > { %s1373_s10 = sshll.u32 (!%p1979_p8), %s2120_s8, 4  ;;  %s209_s24 = scalar_lea.sflag (!%p1979_p8), [#allocation3], %s2120_s8 }
  0x60   : > { %s212_s25 = scalar_lea.vmem (!%p1979_p8), [#allocation2], %s1373_s10  ;;  %p2295_p4 = scmp.ne.s32.totalorder (!%p1979_p8), %s2288_s21, 0 }
  0x65   : > { %1872 = dma.done.wait (%p2295_p4), %s209_s24, 256  }
  0x66   : > { %1874 = vsyncadd (%p2295_p4), %s209_s24, 4294967040  ;;  %p2296_p5 = scmp.eq.s32.totalorder %s1960_s19, 0 }
  0x68   : > { %1876 = dma.done.wait (%p2296_p5), [#allocation6], 1024   ;;  %p2297_p8 = pmov %p2296_p5 }
  0x69   : > { %vm256_vm0 = vcmask 261120   ;;  %v247_v0 = vld [vmem:[#allocation5] sm:$0xff]  ;;  %v248_v1 = vld [vmem:[#allocation5 + $0x8] sm:$0xff]  ;;  %v249_v2 = vld [vmem:[#allocation5 + $0x10] sm:$0xff]  ;;  %vm356_vm1 = vcmask 64512   ;;  %s1904_s21 = smov 112  }
  0x6a   : > { %1878 = vsyncadd (%p2297_p8), [#allocation6], 4294966272  ;;  %v1535_v3 = vpack.c.bf16 %v248_v1, %v247_v0  ;;  %v250_v4 = vld [vmem:[#allocation5 + $0x18] sm:$0xff]  ;;  %v245_v5 = vld [vmem:[%s212_s25] sm:$0xff]  ;;  %s1905_s23 = smov 120   ;;  %s1906_s11 = smov 104  }
  0x6b   : > { %v1539_v6 = vpack.c.bf16 %v250_v4, %v249_v2  ;;  %1465 = vmatprep.mubr.msk.f32.mxu0 %vm256_vm0, %v245_v5  ;;  %v246_v7 = vld [vmem:[%s212_s25 + $0x8] sm:$0xff]  ;;  %s1907_s12 = smov 96   ;;  %vm2149_vm2 = vmpackc.low %vm356_vm1, %vm356_vm1  ;;  %s1908_s30 = smov 64   ;;  %vm701_vm3 = vcmask 130048   ;;  %vm1166_vm4 = vcmask 195584  }
  0x6c   : > { %1536 = vmatprep.subr.bf16.mxu0 %v1535_v3  ;;  %s1909_s6 = smov 8   ;;  %s1910_s7 = smov 16  }
  0x6d   : > { %1538 = vmatpush3.bf16.msra.mxu0 %v1535_v3  ;;  %s1911_s28 = smov 24   ;;  %s244_s29 = scalar_lea.vmem [#allocation8], %s1373_s10 }
  0x6e   : > { %1540 = vmatprep.subr.bf16.mxu0 %v1539_v6  ;;  %s1272_s5 = sshll.u32 %s244_s29, 4  ;;  %s1412_s9 = sshll.u32 %s1960_s19, 8  ;;  %s2228_s5 = int_to_ptr.vmem [resolvable:$true] %s1272_s5 }
  0x6f   : > { %s1259_s10 = scalar_lea.sflag [#allocation4], %s2120_s8  ;;  %s1827_s19 = scalar_lea.vmem %s2228_s5, 256 }
  0x70   : > { %p1828_p11 = scmp.ne.s32.totalorder %s2228_s5, %s1827_s19  ;;  %p2300_p0 = scmp.ne.s32.totalorder %s2293_s13, 0 }
  0x71   : > { %1542 = vmatpush3.bf16.msra.mxu0 %v1539_v6 }
  0x72   : > { %p1829_p2 = pnand %p1828_p11, %p2300_p0 }
  0x74   : > { %1466 = vmatmul.mubr.msk.f32.vlgmr.msra.gmra.mrb[0].mxu0 %vm256_vm0, %v246_v7  ;;  %p1830_p3 = pneg %p1829_p2 }
 0x147   : > { %v1467_v8 = vpop.f32.mrb[0].mxu0 }
 0x148   : > { %346 = vrot.lane.b32.xlu1 %v1467_v8, %s1904_s21  ;;  %v329_v9 = vpop.f32.mrb[1].mxu0 }
 0x149   : > { %340 = vrot.lane.b32.xlu0 %v329_v9, %s1905_s23  ;;  %1472 = vmatprep.mubr.msk.f32.mxu1 %vm356_vm1, %v329_v9  ;;  %v1669_v10 = vpack.i.bf16 %v1467_v8, %v329_v9 }
 0x14c   : > { %344 = vrot.lane.b32.xlu1 %v329_v9, %s1904_s21  ;;  %s2233_s21 = scalar_lea.hbm %s2284_s4, %s1412_s9 }
 0x14d   : > { %342 = vrot.lane.b32.xlu0 %v1467_v8, %s1905_s23  ;;  %s1912_s23 = smov [#allocation8]  }
 0x150   : > { %350 = vrot.lane.b32.xlu1 %v1467_v8, %s1906_s11 }
 0x151   : > { %348 = vrot.lane.b32.xlu0 %v329_v9, %s1906_s11  ;;  %s1831_s11 = sshll.u32 %s1912_s23, 4  ;;  %s1832_s11 = int_to_ptr.vmem [resolvable:$false] %s1831_s11 }
 0x152   : > { %p1834_p7 = scmp.lt.s32.totalorder %s2228_s5, %s1832_s11 }
 0x155   : > { %1670 = vrot.lane.b32.xlu0 %v1669_v10, %s1907_s12 }
 0x1ba   : > { %v347_v11 = vpop.permute.xlu1 %346 }
 0x1bb   : > { %v341_v12 = vpop.permute.xlu0 %340 }
 0x1bc   : > { %1479 = vmatprep.mubr.msk.f32.mxu0 %vm356_vm1, %v341_v12 }
 0x1be   : > { %v345_v13 = vpop.permute.xlu1 %344 }
 0x1bf   : > { %v2138_v14 = vpack.i.bf16 %v347_v11, %v345_v13  ;;  %v343_v15 = vpop.permute.xlu0 %342 }
 0x1c0   : > { %v2140_v16 = vpack.i.bf16 %v343_v15, %v341_v12 }
 0x1c1   : > { %1680 = vrot.lane.b32.xlu0 %v2138_v14, %s1907_s12 }
 0x1c2   : > { %v351_v17 = vpop.permute.xlu1 %350  ;;  %1675 = vrot.lane.b32.xlu1 %v2140_v16, %s1907_s12 }
 0x1c3   : > { %v349_v18 = vpop.permute.xlu0 %348 }
 0x1c4   : > { %v2144_v19 = vpack.i.bf16 %v351_v17, %v349_v18 }
 0x1c6   : > { %1685 = vrot.lane.b32.xlu1 %v2144_v19, %s1907_s12  ;;  %s1833_s12 = scalar_lea.vmem %s1832_s11, 512 }
 0x1c7   : > { %v1671_v20 = vpop.permute.xlu0 %1670  ;;  %p1835_p9 = scmp.lt.s32.totalorder %s1833_s12, %s1827_s19 }
 0x1c8   : > { %v1673_v21 = vunpack.i.h.bf16 %v1671_v20  ;;  %v1672_v22 = vunpack.i.l.bf16 %v1671_v20 }
 0x1c9   : > { %p1836_p12 = por %p1835_p9, %p1834_p7 }
 0x1ca   : > { %1690 = vrot.lane.b32.xlu1 %v1669_v10, %s1908_s30  ;;  %v1543_v24 = vpack.c.bf16 %v1673_v21, %v1672_v22 }
 0x1cb   : > { %p1837_p1 = pnand %p1836_p12, %p1830_p3 }
 0x1cc   : > { %1545 = vmatprep.subr.msk.bf16.mxu1 %vm2149_vm2, %v1543_v24 }
 0x1cd   : > { %1548 = vmatpush3.bf16.xpose.msk.msra.mxu1 %vm2149_vm2, %v1543_v24 }
 0x1d4   : > { %1473 = vmatmul.mubr.msk.f32.vlgmr.msra.gmra.mrb[0].mxu1 %vm356_vm1, %v1467_v8 }
 0x1d5   : > { %1486 = vmatprep.mubr.msk.f32.mxu1 %vm356_vm1, %v345_v13 }
 0x233   : > { %v1681_v25 = vpop.permute.xlu0 %1680 }
 0x234   : > { %v1683_v26 = vunpack.i.h.bf16 %v1681_v25  ;;  %v1682_v27 = vunpack.i.l.bf16 %v1681_v25  ;;  %v1676_v28 = vpop.permute.xlu1 %1675 }
 0x235   : > { %v1678_v29 = vunpack.i.h.bf16 %v1676_v28  ;;  %v1677_v30 = vunpack.i.l.bf16 %v1676_v28 }
 0x236   : > { %v1555_v31 = vpack.c.bf16 %v1683_v26, %v1682_v27 }
 0x237   : > { %v1549_v32 = vpack.c.bf16 %v1678_v29, %v1677_v30 }
 0x238   : > { %v1686_v33 = vpop.permute.xlu1 %1685  ;;  %1557 = vmatprep.subr.msk.bf16.mxu1 %vm2149_vm2, %v1555_v31 }
 0x239   : > { %v1688_v34 = vunpack.i.h.bf16 %v1686_v33  ;;  %v1687_v35 = vunpack.i.l.bf16 %v1686_v33  ;;  %1551 = vmatprep.subr.msk.bf16.mxu0 %vm2149_vm2, %v1549_v32  ;;  %1560 = vmatpush3.bf16.xpose.msk.msra.mxu1 %vm2149_vm2, %v1555_v31 }
 0x23a   : > { %1554 = vmatpush3.bf16.xpose.msk.msra.mxu0 %vm2149_vm2, %v1549_v32 }
 0x23b   : > { %v1561_v36 = vpack.c.bf16 %v1688_v34, %v1687_v35 }
 0x23c   : > { %v1691_v37 = vpop.permute.xlu1 %1690 }
 0x23d   : > { %v1693_v38 = vunpack.i.h.bf16 %v1691_v37  ;;  %v1692_v39 = vunpack.i.l.bf16 %v1691_v37  ;;  %1563 = vmatprep.subr.msk.bf16.mxu0 %vm2149_vm2, %v1561_v36 }
 0x23f   : > { %v1567_v40 = vpack.c.bf16 %v1693_v38, %v1692_v39 }
 0x240   : > { %1487 = vmatmul.mubr.msk.f32.vlgmr.msra.gmra.mrb[2].mxu1 %vm356_vm1, %v347_v11 }
 0x241   : > { %1480 = vmatmul.mubr.msk.f32.vlgmr.msra.gmra.mrb[2].mxu0 %vm356_vm1, %v343_v15  ;;  %1568 = vmatprep.subr.bf16.mxu1 %v1567_v40 }
 0x242   : > { %1566 = vmatpush3.bf16.xpose.msk.msra.mxu0 %vm2149_vm2, %v1561_v36  ;;  %1493 = vmatprep.mubr.msk.f32.mxu0 %vm356_vm1, %v349_v18 }
 0x243   : > { %1570 = vmatpush3.bf16.msra.mxu1 %v1567_v40 }
 0x249   : > { %1494 = vmatmul.mubr.msk.f32.vlgmr.msra.gmra.mrb[4].mxu0 %vm356_vm1, %v351_v17 }
 0x2a7   : > { %v1474_v41 = vpop.f32.mrb[0].mxu1 }
 0x2a8   : > { %v431_v42 = vpop.f32.mrb[1].mxu1  ;;  %v705_v43 = vsel %vm701_vm3, %v1474_v41, -inf }
 0x2a9   : > { %706 = vmax.xlane.f32.xlu1 %v705_v43  ;;  %v702_v44 = vsel %vm701_vm3, %v431_v42, -inf }
 0x2aa   : > { %703 = vmax.xlane.f32.xlu0 %v702_v44 }
 0x313   : > { %v1488_v45 = vpop.f32.mrb[2].mxu1 }
 0x314   : > { %v1481_v46 = vpop.f32.mrb[2].mxu0  ;;  %v605_v47 = vpop.f32.mrb[3].mxu1  ;;  %v717_v51 = vsel %vm701_vm3, %v1488_v45, -inf }
 0x315   : > { %v518_v48 = vpop.f32.mrb[3].mxu0  ;;  %v711_v49 = vsel %vm701_vm3, %v1481_v46, -inf  ;;  %v714_v50 = vsel %vm701_vm3, %v605_v47, -inf }
 0x316   : > { %712 = vmax.xlane.f32.xlu0 %v711_v49  ;;  %715 = vmax.xlane.f32.xlu1 %v714_v50  ;;  %v708_v54 = vsel %vm701_vm3, %v518_v48, -inf }
 0x31a   : > { %718 = vmax.xlane.f32.xlu0 %v717_v51  ;;  %v251_v51 = vld [vmem:[#allocation7] sm:$0xff] }
 0x31c   : > { %v1495_v52 = vpop.f32.mrb[4].mxu0 }
 0x31d   : > { %v2181_v53 = vpop.f32.mrb[5].mxu0  ;;  %v723_v55 = vsel %vm701_vm3, %v1495_v52, -inf }
 0x31e   : > { %709 = vmax.xlane.f32.xlu0 %v708_v54  ;;  %v720_v0 = vsel %vm701_vm3, %v2181_v53, -inf }
 0x322   : > { %724 = vmax.xlane.f32.xlu0 %v723_v55 }
 0x327   : > { %1700 = vrot.lane.b32.xlu1 %v2138_v14, %s1908_s30 }
 0x336   : > { %v707_v56 = vpop.xlane.xlu1 %706 }
 0x337   : > { %v727_v57 = vsub.f32 %v1474_v41, %v707_v56  ;;  %v704_v58 = vpop.xlane.xlu0 %703 }
 0x338   : > { %v726_v59 = vsub.f32 %v431_v42, %v704_v58  ;;  %1695 = vrot.lane.b32.xlu0 %v2140_v16, %s1908_s30 }
 0x339   : > { %v736_v60 = vmul.f32 1.442695, %v727_v57  ;;  %v254_v57 = vld [vmem:[#allocation7 + $0x18] sm:$0xff] }
 0x33a   : > { %v734_v61 = vmul.f32 1.442695, %v726_v59 }
 0x33c   : > { %1709 = vpow2.f32 %v734_v61 }
 0x33d   : > { %1711 = vpow2.f32 %v736_v60 }
 0x346   : > { %v2189_v62 = vpop.eup %1709 }
 0x347   : > { %v1712_v63 = vpop.eup %1711  ;;  %1500 = vmatprep.mubr.msk.f32.mxu1 %vm701_vm3, %v2189_v62  ;;  %v750_v44 = vsel %vm701_vm3, %v2189_v62, 0.0 }
 0x348   : > { %1501 = vmatmul.mubr.msk.f32.vlgmr.msra.gmra.mrb[4].mxu1 %vm701_vm3, %v1712_v63  ;;  %v753_v34 = vsel %vm701_vm3, %v1712_v63, 0.0 }
 0x34b   : > { %721 = vmax.xlane.f32.xlu1 %v720_v0 }
 0x35c   : > { %1705 = vrot.lane.b32.xlu1 %v2144_v19, %s1908_s30 }
 0x3a3   : > { %v713_v1 = vpop.xlane.xlu0 %712  ;;  %v716_v4 = vpop.xlane.xlu1 %715 }
 0x3a4   : > { %v729_v2 = vsub.f32 %v1481_v46, %v713_v1  ;;  %v730_v7 = vsub.f32 %v605_v47, %v716_v4 }
 0x3a6   : > { %v740_v3 = vmul.f32 1.442695, %v729_v2  ;;  %v742_v11 = vmul.f32 1.442695, %v730_v7 }
 0x3a7   : > { %v719_v5 = vpop.xlane.xlu0 %718  ;;  %v1701_v15 = vpop.permute.xlu1 %1700 }
 0x3a8   : > { %1713 = vpow2.f32 %v740_v3  ;;  %v731_v6 = vsub.f32 %v1488_v45, %v719_v5  ;;  %v1703_v20 = vunpack.i.h.bf16 %v1701_v15  ;;  %v1702_v21 = vunpack.i.l.bf16 %v1701_v15 }
 0x3aa   : > { %v744_v8 = vmul.f32 1.442695, %v731_v6  ;;  %v1575_v27 = vpack.c.bf16 %v1703_v20, %v1702_v21 }
 0x3ab   : > { %v710_v9 = vpop.xlane.xlu0 %709 }
 0x3ac   : > { %1715 = vpow2.f32 %v744_v8  ;;  %v728_v10 = vsub.f32 %v518_v48, %v710_v9 }
 0x3ae   : > { %v738_v12 = vmul.f32 1.442695, %v728_v10 }
 0x3af   : > { %v725_v13 = vpop.xlane.xlu0 %724 }
 0x3b0   : > { %1717 = vpow2.f32 %v738_v12  ;;  %v733_v14 = vsub.f32 %v1495_v52, %v725_v13  ;;  %v252_v52 = vld [vmem:[#allocation7 + $0x8] sm:$0xff] }
 0x3b1   : > { %1719 = vpow2.f32 %v742_v11  ;;  %v1583_v56 = vpack.c.bf16 %v252_v52, %v251_v51 }
 0x3b2   : > { %v1714_v16 = vpop.eup %1713  ;;  %v748_v17 = vmul.f32 1.442695, %v733_v14 }
 0x3b3   : > { %v1696_v18 = vpop.permute.xlu0 %1695  ;;  %v759_v19 = vsel %vm701_vm3, %v1714_v16, 0.0  ;;  %1584 = vmatprep.subr.bf16.mxu0 %v1583_v56 }
 0x3b4   : > { %v1698_v22 = vunpack.i.h.bf16 %v1696_v18  ;;  %v1697_v23 = vunpack.i.l.bf16 %v1696_v18  ;;  %760 = vadd.xlane.f32.xlu1 %v759_v19  ;;  %1721 = vpow2.f32 %v748_v17  ;;  %1586 = vmatpush3.bf16.msra.mxu0 %v1583_v56 }
 0x3b6   : > { %v1716_v24 = vpop.eup %1715  ;;  %v1571_v25 = vpack.c.bf16 %v1698_v22, %v1697_v23 }
 0x3b7   : > { %v765_v26 = vsel %vm701_vm3, %v1716_v24, 0.0 }
 0x3b8   : > { %766 = vadd.xlane.f32.xlu0 %v765_v26  ;;  %1572 = vmatprep.subr.bf16.mxu1 %v1571_v25 }
 0x3b9   : > { %1574 = vmatpush3.bf16.msra.mxu1 %v1571_v25 }
 0x3ba   : > { %v1718_v28 = vpop.eup %1717  ;;  %1576 = vmatprep.subr.bf16.mxu1 %v1575_v27 }
 0x3bb   : > { %1507 = vmatprep.mubr.msk.f32.mxu1 %vm701_vm3, %v1718_v28  ;;  %v756_v29 = vsel %vm701_vm3, %v1718_v28, 0.0  ;;  %v1720_v30 = vpop.eup %1719 }
 0x3bc   : > { %757 = vadd.xlane.f32.xlu0 %v756_v29  ;;  %1508 = vmatmul.mubr.msk.f32.vlgmr.msra.gmra.mrb[6].mxu1 %vm701_vm3, %v1714_v16  ;;  %v762_v31 = vsel %vm701_vm3, %v1720_v30, 0.0 }
 0x3bd   : > { %1578 = vmatpush3.bf16.msra.mxu1 %v1575_v27  ;;  %1514 = vmatprep.mubr.msk.f32.mxu1 %vm701_vm3, %v1720_v30 }
 0x3be   : > { %v1722_v32 = vpop.eup %1721 }
 0x3bf   : > { %v771_v33 = vsel %vm701_vm3, %v1722_v32, 0.0 }
 0x3c0   : > { %763 = vadd.xlane.f32.xlu0 %v762_v31  ;;  %1515 = vmatmul.mubr.msk.f32.vlgmr.msra.gmra.mrb[8].mxu1 %vm701_vm3, %v1716_v24  ;;  %v1403_v31 = vld [vmem:[%s2283_s3] ss:$0 sm:$0xff] }
 0x3c4   : > { %772 = vadd.xlane.f32.xlu0 %v771_v33 }
 0x3c8   : > { %754 = vadd.xlane.f32.xlu0 %v753_v34 }
 0x3d8   : > { %v722_v35 = vpop.xlane.xlu1 %721 }
 0x3d9   : > { %v732_v36 = vsub.f32 %v2181_v53, %v722_v35  ;;  %v253_v53 = vld [vmem:[#allocation7 + $0x10] sm:$0xff] }
 0x3da   : > { %v1587_v61 = vpack.c.bf16 %v254_v57, %v253_v53 }
 0x3db   : > { %v746_v37 = vmul.f32 1.442695, %v732_v36 }
 0x3dc   : > { %v1706_v38 = vpop.permute.xlu1 %1705  ;;  %1588 = vmatprep.subr.bf16.mxu0 %v1587_v61 }
 0x3dd   : > { %1723 = vpow2.f32 %v746_v37  ;;  %v1708_v39 = vunpack.i.h.bf16 %v1706_v38  ;;  %v1707_v40 = vunpack.i.l.bf16 %v1706_v38  ;;  %1590 = vmatpush3.bf16.msra.mxu0 %v1587_v61 }
 0x3df   : > { %v1579_v41 = vpack.c.bf16 %v1708_v39, %v1707_v40 }
 0x3e1   : > { %1580 = vmatprep.subr.bf16.mxu1 %v1579_v41 }
 0x3e2   : > { %1582 = vmatpush3.bf16.msra.mxu1 %v1579_v41 }
 0x3e7   : > { %v1724_v42 = vpop.eup %1723 }
 0x3e8   : > { %1521 = vmatprep.mubr.msk.f32.mxu1 %vm701_vm3, %v1724_v42  ;;  %v768_v43 = vsel %vm701_vm3, %v1724_v42, 0.0 }
 0x3e9   : > { %769 = vadd.xlane.f32.xlu1 %v768_v43  ;;  %1522 = vmatmul.mubr.msk.f32.vlgmr.msra.gmra.mrb[10].mxu1 %vm701_vm3, %v1722_v32 }
 0x3ed   : > { %751 = vadd.xlane.f32.xlu1 %v750_v44 }
 0x41b   : > { %v1502_v45 = vpop.f32.mrb[4].mxu1 }
 0x41c   : > { %v852_v46 = vpop.f32.mrb[5].mxu1 }
 0x441   : > { %v761_v48 = vpop.xlane.xlu1 %760 }
 0x442   : > { %1725 = vrcp.f32 %v761_v48 }
 0x445   : > { %v767_v47 = vpop.xlane.xlu0 %766 }
 0x449   : > { %v758_v49 = vpop.xlane.xlu0 %757 }
 0x44a   : > { %1727 = vrcp.f32 %v758_v49 }
 0x44b   : > { %1729 = vrcp.f32 %v767_v47 }
 0x44c   : > { %v1726_v54 = vpop.eup %1725 }
 0x44d   : > { %v764_v50 = vpop.xlane.xlu0 %763 }
 0x44e   : > { %1731 = vrcp.f32 %v764_v50 }
 0x451   : > { %v773_v5 = vpop.xlane.xlu0 %772 }
 0x452   : > { %1733 = vrcp.f32 %v773_v5 }
 0x454   : > { %v1728_v58 = vpop.eup %1727 }
 0x455   : > { %v1730_v63 = vpop.eup %1729  ;;  %v755_v14 = vpop.xlane.xlu0 %754 }
 0x458   : > { %v1732_v3 = vpop.eup %1731 }
 0x45c   : > { %v1734_v7 = vpop.eup %1733 }
 0x476   : > { %v770_v6 = vpop.xlane.xlu1 %769 }
 0x477   : > { %1735 = vrcp.f32 %v770_v6 }
 0x47a   : > { %v752_v13 = vpop.xlane.xlu1 %751 }
 0x47b   : > { %1737 = vrcp.f32 %v752_v13 }
 0x47c   : > { %1739 = vrcp.f32 %v755_v14 }
 0x481   : > { %v1736_v9 = vpop.eup %1735 }
 0x485   : > { %v1738_v17 = vpop.eup %1737 }
 0x486   : > { %v1740_v18 = vpop.eup %1739  ;;  %v1123_v21 = vmul.f32 %v1738_v17, %v852_v46 }
 0x487   : > { %v1125_v22 = vmul.f32 %v1740_v18, %v1502_v45 }
 0x48f   : > { %v1509_v55 = vpop.f32.mrb[6].mxu1 }
 0x490   : > { %v1129_v59 = vmul.f32 %v1726_v54, %v1509_v55  ;;  %v939_v60 = vpop.f32.mrb[7].mxu1 }
 0x491   : > { %v1127_v62 = vmul.f32 %v1728_v58, %v939_v60 }
 0x492   : > { %1142 = vrot.lane.b32.xlu0 %v1129_v59, %s1909_s6 }
 0x493   : > { %1140 = vrot.lane.b32.xlu1 %v1127_v62, %s1909_s6  ;;  %v1516_v0 = vpop.f32.mrb[8].mxu1 }
 0x494   : > { %v1133_v1 = vmul.f32 %v1730_v63, %v1516_v0  ;;  %v1026_v2 = vpop.f32.mrb[9].mxu1 }
 0x495   : > { %v1131_v4 = vmul.f32 %v1732_v3, %v1026_v2 }
 0x497   : > { %1150 = vrot.lane.b32.xlu1 %v1133_v1, %s1910_s7 }
 0x49b   : > { %1148 = vrot.lane.b32.xlu1 %v1131_v4, %s1910_s7 }
 0x4bc   : > { %v1523_v8 = vpop.f32.mrb[10].mxu1 }
 0x4bd   : > { %v1137_v10 = vmul.f32 %v1734_v7, %v1523_v8  ;;  %v1113_v11 = vpop.f32.mrb[11].mxu1 }
 0x4be   : > { %v1135_v12 = vmul.f32 %v1736_v9, %v1113_v11 }
 0x4bf   : > { %1158 = vrot.lane.b32.xlu1 %v1137_v10, %s1911_s28 }
 0x4c0   : > { %1156 = vrot.lane.b32.xlu0 %v1135_v12, %s1911_s28 }
 0x504   : > { %v1143_v20 = vpop.permute.xlu0 %1142 }
 0x505   : > { %v1141_v15 = vpop.permute.xlu1 %1140  ;;  %v1163_v25 = vsel %vm356_vm1, %v1125_v22, %v1143_v20 }
 0x506   : > { %v1162_v23 = vsel %vm356_vm1, %v1123_v21, %v1141_v15 }
 0x509   : > { %v1151_v16 = vpop.permute.xlu1 %1150 }
 0x50a   : > { %v1165_v28 = vsel %vm701_vm3, %v1163_v25, %v1151_v16 }
 0x50d   : > { %v1149_v19 = vpop.permute.xlu1 %1148 }
 0x50e   : > { %v1164_v26 = vsel %vm701_vm3, %v1162_v23, %v1149_v19 }
 0x531   : > { %v1159_v24 = vpop.permute.xlu1 %1158 }
 0x532   : > { %v1157_v27 = vpop.permute.xlu0 %1156  ;;  %v1168_v30 = vsel %vm1166_vm4, %v1165_v28, %v1159_v24 }
 0x533   : > { %v1167_v29 = vsel %vm1166_vm4, %v1164_v26, %v1157_v27 }
 0x534   : > { %1532 = vmatprep.mubr.msk.f32.mxu0 %vm256_vm0, %v1167_v29 }
 0x535   : > { %1533 = vmatmul.mubr.msk.f32.vlgmr.msra.gmra.mrb[6].mxu0 %vm256_vm0, %v1168_v30 }
 0x608   : > { %v1534_v32 = vpop.f32.mrb[6].mxu0 }
 0x609   : > { %v1253_v33 = vadd.f32 %v1534_v32, %v1403_v31  ;;  %v1247_v34 = vpop.f32.mrb[7].mxu0 }
 0x60a   : > { %v1248_v35 = vadd.f32 %v1403_v31, %v1247_v34 }
 0x60b   : > { %1257 = vst.msk [vmem:[%s244_s29 + $0x8] sm:$0xff] %vm256_vm0, %v1253_v33 }
 0x60c   : > { %1256 = vst.msk [vmem:[%s244_s29] sm:$0xff] %vm256_vm0, %v1248_v35 }
 0x60d   : > { %1840 = shalt.err (!%p1837_p1)
}
 0x60e   : > { %s1841_s30 = scalar_lea.hbm %s2233_s21, 256  ;;  %s1845_s27 = scalar_lea.hbm %s2284_s4, 512 }
 0x60f   : > { %p1842_p13 = scmp.ne.s32.totalorder %s2233_s21, %s1841_s30  ;;  %p1846_p4 = scmp.lt.u32.totalorder %s2233_s21, %s2284_s4 }
 0x610   : > { %p1847_p5 = scmp.lt.u32.totalorder %s1845_s27, %s1841_s30  ;;  %p1849_p11 = scmp.lt.u32.totalorder %s1841_s30, %s2233_s21 }
 0x611   : > { %p1843_p6 = pnand %p1842_p13, %p2300_p0 }
 0x612   : > { %p1848_p8 = por %p1847_p5, %p1846_p4 }
 0x613   : > { %p1844_p10 = pneg %p1843_p6 }
 0x614   : > { %p1850_p2 = por %p1849_p11, %p1848_p8 }
 0x616   : > { %p1851_p3 = pnand %p1850_p2, %p1844_p10 }
 0x618   : > { %1854 = shalt.err (!%p1851_p3)
}
 0x619   : > { %s1913_s9 = smov 128  }
 0x61a   : > { %1601 = dma.vmem_to_hbm [thread:$0]  (%p2300_p0), %s2228_s5, 256, %s2233_s21, %s1259_s10, %s1913_s9, %s1913_s9, %s1909_s6  }
 0x61b PF: > { %s1287_s24 = sand.u32 1, %s1885_s15   ;;  %p2301_p7 = scmp.ne.s32.totalorder %s2289_s22, 0 }
 0x61c   : > { %p2302_p9 = scmp.ge.s32.totalorder %s1897_s18, 2  ;;  %s1288_s25 = scalar_lea.sflag [#allocation4], %s1287_s24 }
 0x61e   : > { %p1615_p12 = pnand %p2302_p9, %p2301_p7 }
 0x620   : > { %1880 = dma.done.wait (!%p1615_p12), %s1288_s25, 256  }
 0x621   : > { %1882 = vsyncadd (!%p1615_p12), %s1288_s25, 4294967040  ;;  %p18_p1 = scmp.ge.s32.totalorder %s2055_s26, 4   ;;  %s2303_s15 = smov %s1889_s16 }
 0x622   : > { %s2304_s16 = smov %s1893_s17  ;;  %s2305_s17 = smov %s2071_s14 }
 0x623   : > { %s2306_s18 = smov %s2055_s26  ;;  %20 = sbr.rel (!%p18_p1) target bundleno = 6 (0x6), region = 89 }
 0x62a   :  { %1293 = vsyncpa [#allocation3], 1 }
 0x62b   :  { %1295 = vsyncpa [#allocation3 + $0x1], 1 }
 0x62c   :  { %1296 = vsyncpa [#allocation6], 1 }
 0x62d   :  { %1297 = vsyncpa [#allocation4], 1 }
 0x62e   :  { %1299 = vsyncpa [#allocation4 + $0x1], 1 }

</bundles_post_ra>
